<compile_context>
chip_gen: v7x
topology: tpu7x:2x2x1
jax: 0.10.0
libtpu: 0.0.40
codegen_flags: <defaults>
</compile_context>

<pallas_src>
import functools

import jax
import jax.numpy as jnp
from jax.experimental import pallas as pl
from jax.experimental.pallas import tpu as pltpu

BN_EPS = 1e-5


def _ru(x, m):
    return (x + m - 1) // m * m


def _tile_m(m, target=512):
    """Pick an M tile (multiple of 8) and the padded M."""
    mp = _ru(m, 8)
    if mp >= target:
        tm = target
        mp = _ru(m, tm)
    else:
        tm = mp
    return mp, tm


def _tile_last(n, target):
    """Pick a lane-dim tile (multiple of 128) and the padded size."""
    np_ = _ru(n, 128)
    if np_ >= target:
        t = target
        np_ = _ru(n, t)
    else:
        t = np_
    return np_, t


# ---------------- Pallas kernels (hot path) ----------------

def _conv_bn_kernel(a_ref, w_ref, sb_ref, o_ref, acc_ref, *, relu):
    @pl.when(pl.program_id(2) == 0)
    def _():
        acc_ref[...] = jnp.zeros_like(acc_ref)

    acc_ref[...] += jnp.dot(a_ref[...], w_ref[...],
                            preferred_element_type=jnp.float32)

    @pl.when(pl.program_id(2) == pl.num_programs(2) - 1)
    def _():
        out = acc_ref[...] * sb_ref[0:1, :] + sb_ref[1:2, :]
        if relu:
            out = jnp.maximum(out, 0.0)
        o_ref[...] = out.astype(o_ref.dtype)


def _conv_bn_res_kernel(a_ref, w_ref, sb_ref, r_ref, o_ref, acc_ref, *, relu):
    @pl.when(pl.program_id(2) == 0)
    def _():
        acc_ref[...] = jnp.zeros_like(acc_ref)

    acc_ref[...] += jnp.dot(a_ref[...], w_ref[...],
                            preferred_element_type=jnp.float32)

    @pl.when(pl.program_id(2) == pl.num_programs(2) - 1)
    def _():
        out = (acc_ref[...] * sb_ref[0:1, :] + sb_ref[1:2, :]
               + r_ref[...].astype(jnp.float32))
        if relu:
            out = jnp.maximum(out, 0.0)
        o_ref[...] = out.astype(o_ref.dtype)


def _conv_bn_ds_kernel(a_ref, w_ref, sb_ref, ax_ref, wd_ref,
                       o_ref, acc_ref, res_ref, *, relu):
    # Main 3x3 conv accumulated over K.  The downsample 1x1 conv residual is
    # computed once at K==0 into a second scratch (overlaps with subsequent
    # K-step DMAs) and added only at finalize.
    @pl.when(pl.program_id(2) == 0)
    def _():
        acc_ref[...] = jnp.zeros_like(acc_ref)
        res = jnp.dot(ax_ref[...], wd_ref[...],
                      preferred_element_type=jnp.float32)
        res_ref[...] = res * sb_ref[2:3, :] + sb_ref[3:4, :]

    acc_ref[...] += jnp.dot(a_ref[...], w_ref[...],
                            preferred_element_type=jnp.float32)

    @pl.when(pl.program_id(2) == pl.num_programs(2) - 1)
    def _():
        out = acc_ref[...] * sb_ref[0:1, :] + sb_ref[1:2, :] + res_ref[...]
        if relu:
            out = jnp.maximum(out, 0.0)
        o_ref[...] = out.astype(o_ref.dtype)


def _maxpool_kernel(x_ref, o_ref):
    # x_ref: (9, TM, C) — one clean (8,128)-aligned 2D tile per tap.
    r = x_ref[0]
    for t in range(1, 9):
        r = jnp.maximum(r, x_ref[t])
    o_ref[...] = r


# ---------------- glue (im2col, wrappers) ----------------

def _extract_patches(x, kh, kw, stride, padding, dilation, pad_value):
    # x: (N, H, W, C) -> list of kh*kw tap slices, each (N, Ho, Wo, C).
    # Built in x's dtype (bf16) so no f32 intermediate is materialized.
    n, h, w, c = x.shape
    xp = jnp.pad(x, ((0, 0), (padding, padding), (padding, padding), (0, 0)),
                 constant_values=pad_value)
    ho = (h + 2 * padding - dilation * (kh - 1) - 1) // stride + 1
    wo = (w + 2 * padding - dilation * (kw - 1) - 1) // stride + 1
    cols = []
    for i in range(kh):
        for j in range(kw):
            di, dj = i * dilation, j * dilation
            cols.append(xp[:, di:di + stride * (ho - 1) + 1:stride,
                           dj:dj + stride * (wo - 1) + 1:stride, :])
    return cols, ho, wo


def _fold_bn(bn):
    scale = (bn['gamma'] / jnp.sqrt(bn['var'] + BN_EPS)).astype(jnp.float32)
    bias = (bn['beta'] - bn['mean'] * scale).astype(jnp.float32)
    return scale, bias


def conv_bn(x, w, bn, *, stride=1, padding=0, dilation=1, relu=True,
            residual=None, downsample=None):
    """Fused conv + folded-BN (+ residual / fused downsample) + optional ReLU.

    x: (N,H,W,Cin) NHWC bf16; w: (Cout,Cin,kh,kw) f32 (PyTorch layout).
    residual:   optional (N,Ho,Wo,Cout) bf16 tensor added before ReLU.
    downsample: optional (x_in, ds_w, ds_bn, ds_stride) — 1x1 conv + BN
                residual branch fused into this kernel.
    Returns bf16 NHWC output.
    """
    n = x.shape[0]
    cout, cin, kh, kw = w.shape
    cols, ho, wo = _extract_patches(x, kh, kw, stride, padding, dilation, 0.0)
    m = n * ho * wo
    k = kh * kw * cin

    # im2col built directly in bf16; K order = (kh, kw, cin) to match weights.
    a = jnp.stack(cols, axis=3).reshape(m, k)
    wmat = jnp.transpose(w, (2, 3, 1, 0)).reshape(k, cout).astype(jnp.bfloat16)
    scale, bias = _fold_bn(bn)

    mp, tm = _tile_m(m, 512)
    gm = mp // tm
    np_, tn = _tile_last(cout, 512)          # gn == 1 for all ResNet-18 layers
    # v7x megacore: if only one M tile, split Cout so both TCs get work.
    if gm == 1 and np_ // tn == 1 and np_ >= 256 and (np_ // 2) % 128 == 0:
        tn = np_ // 2
    gn = np_ // tn
    kp, tk = _tile_last(k, 1152)
    gk = kp // tk

    a_p = jnp.pad(a, ((0, mp - m), (0, kp - k)))
    w_p = jnp.pad(wmat, ((0, kp - k), (0, np_ - cout)))

    grid = (gm, gn, gk)
    in_specs = [
        pl.BlockSpec((tm, tk), lambda i, j, l: (i, l)),
        pl.BlockSpec((tk, tn), lambda i, j, l: (l, j)),
    ]
    args = [a_p, w_p]
    flops = 2 * mp * kp * np_
    # A is re-read gn times, W re-read gm times; output written once (bf16).
    bytes_accessed = a_p.size * 2 * gn + w_p.size * 2 * gm + mp * np_ * 2

    if downsample is not None:
        x_in, ds_w, ds_bn, ds_stride = downsample
        cin_d = ds_w.shape[1]
        ax = x_in[:, ::ds_stride, ::ds_stride, :].reshape(m, cin_d)   # bf16
        wd = jnp.transpose(ds_w, (2, 3, 1, 0)).reshape(cin_d, cout)
        wd = wd.astype(jnp.bfloat16)
        sd, bd = _fold_bn(ds_bn)
        sb = jnp.stack([scale, bias, sd, bd], axis=0)                 # (4,cout)
        sb_p = jnp.pad(sb, ((0, 0), (0, np_ - cout)))
        kd = _ru(cin_d, 128)
        ax_p = jnp.pad(ax, ((0, mp - m), (0, kd - cin_d)))
        wd_p = jnp.pad(wd, ((0, kd - cin_d), (0, np_ - cout)))
        in_specs += [
            pl.BlockSpec((4, tn), lambda i, j, l: (0, j)),
            pl.BlockSpec((tm, kd), lambda i, j, l: (i, 0)),
            pl.BlockSpec((kd, tn), lambda i, j, l: (0, j)),
        ]
        args += [sb_p, ax_p, wd_p]
        scratch = [pltpu.VMEM((tm, tn), jnp.float32),
                   pltpu.VMEM((tm, tn), jnp.float32)]
        kernel = functools.partial(_conv_bn_ds_kernel, relu=relu)
        flops += 2 * mp * kd * np_
        bytes_accessed += ax_p.size * 2 + wd_p.size * 2 * gm + sb_p.size * 4
    elif residual is not None:
        sb = jnp.stack([scale, bias], axis=0)
        sb_p = jnp.pad(sb, ((0, 0), (0, np_ - cout)))
        r_p = jnp.pad(residual.reshape(m, cout),
                      ((0, mp - m), (0, np_ - cout)))                 # bf16
        in_specs += [
            pl.BlockSpec((2, tn), lambda i, j, l: (0, j)),
            pl.BlockSpec((tm, tn), lambda i, j, l: (i, j)),
        ]
        args += [sb_p, r_p]
        scratch = [pltpu.VMEM((tm, tn), jnp.float32)]
        kernel = functools.partial(_conv_bn_res_kernel, relu=relu)
        bytes_accessed += r_p.size * 2 + sb_p.size * 4
    else:
        sb = jnp.stack([scale, bias], axis=0)
        sb_p = jnp.pad(sb, ((0, 0), (0, np_ - cout)))
        in_specs.append(pl.BlockSpec((2, tn), lambda i, j, l: (0, j)))
        args.append(sb_p)
        scratch = [pltpu.VMEM((tm, tn), jnp.float32)]
        kernel = functools.partial(_conv_bn_kernel, relu=relu)
        bytes_accessed += sb_p.size * 4

    out = pl.pallas_call(
        kernel,
        out_shape=jax.ShapeDtypeStruct((mp, np_), jnp.bfloat16),
        grid_spec=pltpu.PrefetchScalarGridSpec(
            num_scalar_prefetch=0,
            grid=grid,
            in_specs=in_specs,
            out_specs=pl.BlockSpec((tm, tn), lambda i, j, l: (i, j)),
            scratch_shapes=scratch,
        ),
        compiler_params=pltpu.CompilerParams(
            dimension_semantics=("parallel", "parallel", "arbitrary")),
        cost_estimate=pl.CostEstimate(
            flops=int(flops), transcendentals=0,
            bytes_accessed=int(bytes_accessed)),
    )(*args)
    return out[:m, :cout].reshape(n, ho, wo, cout)


def maxpool_3x3_s2(x):
    # MaxPool2d(kernel_size=3, stride=2, padding=1), NHWC bf16, tiled over M.
    n, h, w, c = x.shape
    cols, ho, wo = _extract_patches(x, 3, 3, 2, 1, 1, -jnp.inf)
    m = n * ho * wo
    p = jnp.stack(cols, axis=0).reshape(9, m, c)   # taps on leading axis
    mp, tm = _tile_m(m, 1024)
    cp = _ru(c, 128)
    p_p = jnp.pad(p, ((0, 0), (0, mp - m), (0, cp - c)),
                  constant_values=-jnp.inf)
    out = pl.pallas_call(
        _maxpool_kernel,
        out_shape=jax.ShapeDtypeStruct((mp, cp), jnp.bfloat16),
        grid_spec=pltpu.PrefetchScalarGridSpec(
            num_scalar_prefetch=0,
            grid=(mp // tm,),
            in_specs=[pl.BlockSpec((9, tm, cp), lambda i: (0, i, 0))],
            out_specs=pl.BlockSpec((tm, cp), lambda i: (i, 0)),
        ),
        compiler_params=pltpu.CompilerParams(
            dimension_semantics=("parallel",)),
        cost_estimate=pl.CostEstimate(
            flops=int(8 * mp * cp), transcendentals=0,
            bytes_accessed=int(p_p.size * 2 + mp * cp * 2)),
    )(p_p)
    return out[:m, :c].reshape(n, ho, wo, c)


# ---------------- ResNet-18 structure ----------------

def basic_block(x, p, stride, dilation=1):
    # BasicBlock: conv3x3(stride)->bn->relu->conv3x3->bn (+residual) ->relu
    out = conv_bn(x, p['conv1_w'], p['bn1'], stride=stride, padding=dilation,
                  dilation=dilation, relu=True)
    if 'ds_w' in p:
        # downsample 1x1 conv + BN fused into conv2's kernel
        out = conv_bn(out, p['conv2_w'], p['bn2'], stride=1, padding=1,
                      relu=True,
                      downsample=(x, p['ds_w'], p['ds_bn'], stride))
    else:
        out = conv_bn(out, p['conv2_w'], p['bn2'], stride=1, padding=1,
                      relu=True, residual=x)
    return out


def resnet_forward(x_nchw, params):
    # NCHW f32 -> NHWC bf16 once; bf16 activations end-to-end.
    x = jnp.transpose(x_nchw, (0, 2, 3, 1)).astype(jnp.bfloat16)
    # stem: 7x7/2 conv + BN + ReLU + 3x3/2 maxpool
    x = conv_bn(x, params['conv1_w'], params['bn1'], stride=2, padding=3,
                relu=True)
    x = maxpool_3x3_s2(x)
    outs = []
    for i, stage in enumerate(params['stages']):
        for j, blk in enumerate(stage):
            stride = params['strides'][i] if j == 0 else 1
            x = basic_block(x, blk, stride, dilation=params['dilations'][i])
        if i in params['out_indices']:
            # NCHW + f32 only at the emitted stage outputs.
            outs.append(jnp.transpose(x, (0, 3, 1, 2)).astype(jnp.float32))
    if len(outs) == 1:
        return outs[0]
    return tuple(outs)


# ---------------- deterministic parameter init ----------------

def _init_conv(key, cout, cin, kh, kw):
    fan = cin * kh * kw
    std = (2.0 / fan) ** 0.5  # kaiming
    return std * jax.random.normal(key, (cout, cin, kh, kw), jnp.float32)


def _init_bn(key, c):
    k1, k2, k3, k4 = jax.random.split(key, 4)
    return dict(
        gamma=jax.random.uniform(k1, (c,), jnp.float32, 0.5, 1.5),
        beta=0.1 * jax.random.normal(k2, (c,), jnp.float32),
        mean=0.1 * jax.random.normal(k3, (c,), jnp.float32),
        var=jax.random.uniform(k4, (c,), jnp.float32, 0.5, 1.5),
    )


def init_resnet18_params(key):
    # depth=18 -> (BasicBlock, (2, 2, 2, 2)), expansion=1
    strides = (1, 2, 2, 2)
    dilations = (1, 1, 1, 1)
    stage_blocks = (2, 2, 2, 2)
    keys = list(jax.random.split(key, 2 + sum(stage_blocks) * 6))
    it = iter(keys)
    params = dict(
        conv1_w=_init_conv(next(it), 64, 3, 7, 7),
        bn1=_init_bn(next(it), 64),
        strides=strides,
        dilations=dilations,
        out_indices=(0, 1, 2, 3),
        stages=[],
    )
    inplanes = 64
    for i, nb in enumerate(stage_blocks):
        planes = 64 * 2 ** i
        stage = []
        for j in range(nb):
            stride = strides[i] if j == 0 else 1
            blk = dict(
                conv1_w=_init_conv(next(it), planes, inplanes, 3, 3),
                bn1=_init_bn(next(it), planes),
                conv2_w=_init_conv(next(it), planes, planes, 3, 3),
                bn2=_init_bn(next(it), planes),
            )
            if stride != 1 or inplanes != planes:  # downsample branch
                blk['ds_w'] = _init_conv(next(it), planes, inplanes, 1, 1)
                blk['ds_bn'] = _init_bn(next(it), planes)
            stage.append(blk)
            inplanes = planes
        params['stages'].append(stage)
    return params


# TODO(synk): DCN / modulated-DCN and CrissCrossAttention (non-local) branches
# are disabled by default in this module config and are not implemented here.


if __name__ == "__main__":
    key = jax.random.PRNGKey(0)
    pkey, xkey = jax.random.split(key)
    params = init_resnet18_params(pkey)
    x = jax.random.normal(xkey, (2, 3, 32, 32), jnp.float32)

    outs = resnet_forward(x, params)
    outs = jax.block_until_ready(outs)

    expected = ((2, 64, 8, 8), (2, 128, 4, 4), (2, 256, 2, 2), (2, 512, 1, 1))
    assert tuple(o.shape for o in outs) == expected, \
        [tuple(o.shape) for o in outs]
    assert all(bool(jnp.all(jnp.isfinite(o))) for o in outs)
    print("KERNEL_OK")
</pallas_src>

<mosaic_0001>
module attributes {stable_mosaic.version = 11 : i64} {
  func.func @_conv_bn_kernel(%arg0: i32, %arg1: i32, %arg2: i32, %arg3: memref<512x256xbf16, #tpu.memory_space<vmem>>, %arg4: memref<256x128xbf16, #tpu.memory_space<vmem>>, %arg5: memref<2x128xf32, #tpu.memory_space<vmem>>, %arg6: memref<512x128xbf16, #tpu.memory_space<vmem>>, %arg7: memref<512x128xf32, #tpu.memory_space<vmem>>) attributes {dimension_semantics = [#tpu.dimension_semantics<parallel>, #tpu.dimension_semantics<parallel>, #tpu.dimension_semantics<arbitrary>], iteration_bounds = array<i64: 1, 1, 1>, scalar_prefetch = 0 : i64, scratch_operands = 1 : i64, tpu.core_type = #tpu.core_type<tc>, window_params = [{transform_indices = @transform_0, window_bounds = array<i64: 512, 256>}, {transform_indices = @transform_1, window_bounds = array<i64: 256, 128>}, {transform_indices = @transform_2, window_bounds = array<i64: 2, 128>}, {transform_indices = @transform_3, window_bounds = array<i64: 512, 128>}]} {
    %c0_i32 = arith.constant 0 : i32
    %0 = arith.cmpi eq, %arg2, %c0_i32 : i32
    %1 = arith.extui %0 : i1 to i32
    %c0_i32_0 = arith.constant 0 : i32
    %2 = arith.cmpi ne, %1, %c0_i32_0 : i32
    scf.if %2 {
      %cst_10 = arith.constant 0.000000e+00 : f32
      %12 = vector.broadcast %cst_10 : f32 to vector<512x128xf32>
      %c0_11 = arith.constant 0 : index
      %c0_12 = arith.constant 0 : index
      %13 = vector.load %arg7[%c0_11, %c0_12] : memref<512x128xf32, #tpu.memory_space<vmem>>, vector<512x128xf32>
      tpu.vector_store %arg7[%c0_11, %c0_12], %12 {strides = array<i32>} : memref<512x128xf32, #tpu.memory_space<vmem>>, vector<512x128xf32>,
    } else {
    }
    %c0 = arith.constant 0 : index
    %c0_1 = arith.constant 0 : index
    %3 = vector.load %arg7[%c0, %c0_1] : memref<512x128xf32, #tpu.memory_space<vmem>>, vector<512x128xf32>
    %c0_2 = arith.constant 0 : index
    %c0_3 = arith.constant 0 : index
    %4 = vector.load %arg3[%c0_2, %c0_3] : memref<512x256xbf16, #tpu.memory_space<vmem>>, vector<512x256xbf16>
    %c0_4 = arith.constant 0 : index
    %c0_5 = arith.constant 0 : index
    %5 = vector.load %arg4[%c0_4, %c0_5] : memref<256x128xbf16, #tpu.memory_space<vmem>>, vector<256x128xbf16>
    %cst = arith.constant dense<0.000000e+00> : vector<512x128xf32>
    %6 = tpu.matmul %4, %5, %cst {dimension_numbers = #tpu.dot_dimension_numbers<[1], [0], [0], [1], [0, 0, 1, 1], [], []>} : vector<512x256xbf16>, vector<256x128xbf16>, vector<512x128xf32> -> vector<512x128xf32>
    %7 = arith.addf %3, %6 : vector<512x128xf32>
    %c0_6 = arith.constant 0 : index
    %c0_7 = arith.constant 0 : index
    %8 = vector.load %arg7[%c0_6, %c0_7] : memref<512x128xf32, #tpu.memory_space<vmem>>, vector<512x128xf32>
    tpu.vector_store %arg7[%c0_6, %c0_7], %7 {strides = array<i32>} : memref<512x128xf32, #tpu.memory_space<vmem>>, vector<512x128xf32>,
    %c0_i32_8 = arith.constant 0 : i32
    %9 = arith.cmpi eq, %arg2, %c0_i32_8 : i32
    %10 = arith.extui %9 : i1 to i32
    %c0_i32_9 = arith.constant 0 : i32
    %11 = arith.cmpi ne, %10, %c0_i32_9 : i32
    scf.if %11 {
      %c0_10 = arith.constant 0 : index
      %c0_11 = arith.constant 0 : index
      %12 = vector.load %arg7[%c0_10, %c0_11] : memref<512x128xf32, #tpu.memory_space<vmem>>, vector<512x128xf32>
      %c0_12 = arith.constant 0 : index
      %c0_13 = arith.constant 0 : index
      %13 = vector.load %arg5[%c0_12, %c0_13] : memref<2x128xf32, #tpu.memory_space<vmem>>, vector<1x128xf32>
      %14 = vector.broadcast %13 : vector<1x128xf32> to vector<512x128xf32>
      %15 = arith.mulf %12, %14 : vector<512x128xf32>
      %c1 = arith.constant 1 : index
      %c0_14 = arith.constant 0 : index
      %16 = vector.load %arg5[%c1, %c0_14] : memref<2x128xf32, #tpu.memory_space<vmem>>, vector<1x128xf32>
      %17 = vector.broadcast %16 : vector<1x128xf32> to vector<512x128xf32>
      %18 = arith.addf %15, %17 : vector<512x128xf32>
      %cst_15 = arith.constant 0.000000e+00 : f32
      %19 = vector.broadcast %cst_15 : f32 to vector<512x128xf32>
      %20 = arith.maximumf %18, %19 : vector<512x128xf32>
      %21 = arith.truncf %20 : vector<512x128xf32> to vector<512x128xbf16>
      %c0_16 = arith.constant 0 : index
      %c0_17 = arith.constant 0 : index
      %22 = vector.load %arg6[%c0_16, %c0_17] : memref<512x128xbf16, #tpu.memory_space<vmem>>, vector<512x128xbf16>
      tpu.vector_store %arg6[%c0_16, %c0_17], %21 {strides = array<i32>} : memref<512x128xbf16, #tpu.memory_space<vmem>>, vector<512x128xbf16>,
    } else {
    }
    return
  }
  func.func @transform_0(%arg0: i32, %arg1: i32, %arg2: i32) -> (i32, i32) {
    %c0_i32 = arith.constant 0 : i32
    return %arg0, %arg2 : i32, i32
  }
  func.func @transform_1(%arg0: i32, %arg1: i32, %arg2: i32) -> (i32, i32) {
    %c0_i32 = arith.constant 0 : i32
    return %arg2, %arg1 : i32, i32
  }
  func.func @transform_2(%arg0: i32, %arg1: i32, %arg2: i32) -> (i32, i32) {
    %c0_i32 = arith.constant 0 : i32
    %c0_i32_0 = arith.constant 0 : i32
    return %c0_i32, %arg1 : i32, i32
  }
  func.func @transform_3(%arg0: i32, %arg1: i32, %arg2: i32) -> (i32, i32) {
    %c0_i32 = arith.constant 0 : i32
    return %arg0, %arg1 : i32, i32
  }
}

</mosaic_0001>

<bundles_post_ra>
// kernel: tpu_custom_call.1
= control target key start
LH: loop header
LB: loop body
LE: loop exit
PB: predicated region body
PF: predicated region fallthrough
CT: control target
= control target key end

     0   :  { %8 = vsyncpa [#allocation4], 0  ;;  %s2577_s0 = inlined_call_operand.hbm [shape: bf16[512,256], index: 0, kind: input, shape index: {}]   ;;  %s2578_s1 = inlined_call_operand.hbm [shape: bf16[256,128], index: 1, kind: input, shape index: {}]   ;;  %s2579_s2 = inlined_call_operand.vmem [shape: f32[2,128], index: 2, kind: input, shape index: {}]   ;;  %s2580_s3 = inlined_call_operand.hbm [shape: bf16[512,128], index: 3, kind: output, shape index: {}]  }
   0x1   :  { %9 = vsyncpa [#allocation7], 0 }
   0x2   :  { %10 = vsyncpa [#allocation5], 0  ;;  %s2337_s12 = smov [#allocation3]   ;;  %s2265_s16 = scalar_lea.hbm %s2577_s0, 8192 }
   0x3   :  { %s16_s13 = sshll.u32 %s2337_s12, 4  ;;  %p2266_p0 = scmp.ne.s32.totalorder %s2577_s0, %s2265_s16  ;;  %s17_s13 = int_to_ptr.vmem [resolvable:$true] %s16_s13 }
   0x4   :  { %p2269_p1 = scmp.lt.u32.totalorder %s2265_s16, %s2577_s0 }
   0x6   :  { %p2271_p2 = pnand %p2269_p1, %p2266_p0 }
   0x8   :  { %2274 = shalt.err (!%p2271_p2)
}
   0x9   :  { %s2275_s21 = scalar_lea.vmem %s17_s13, 8192  ;;  %p2280_p4 = scmp.lt.s32.totalorder %s17_s13, %s17_s13 }
   0xa   :  { %p2276_p3 = scmp.ne.s32.totalorder %s17_s13, %s2275_s21  ;;  %p2281_p5 = scmp.lt.s32.totalorder %s2275_s21, %s2275_s21 }
   0xc   :  { %p2282_p6 = por %p2281_p5, %p2280_p4 }
   0xe   :  { %p2283_p7 = pnand %p2282_p6, %p2276_p3 }
  0x10   :  { %2286 = shalt.err (!%p2283_p7)
}
  0x11   :  { %s2338_s22 = smov 128   ;;  %s2339_s23 = smov 8  }
  0x12   :  { %22 = dma.hbm_to_vmem [thread:$0]  %s2577_s0, 8192, %s17_s13, [#allocation4], %s2338_s22, %s2338_s22, %s2339_s23  }
  0x13   :  { %s2340_s26 = smov [#allocation6]   ;;  %s2287_s30 = scalar_lea.hbm %s2578_s1, 2048 }
  0x14   :  { %s28_s27 = sshll.u32 %s2340_s26, 4  ;;  %p2288_p8 = scmp.ne.s32.totalorder %s2578_s1, %s2287_s30  ;;  %s29_s27 = int_to_ptr.vmem [resolvable:$true] %s28_s27 }
  0x15   :  { %p2291_p9 = scmp.lt.u32.totalorder %s2287_s30, %s2578_s1 }
  0x17   :  { %p2293_p10 = pnand %p2291_p9, %p2288_p8 }
  0x19   :  { %2296 = shalt.err (!%p2293_p10)
}
  0x1a   :  { %s2297_s8 = scalar_lea.vmem %s29_s27, 2048  ;;  %p2302_p12 = scmp.lt.s32.totalorder %s29_s27, %s29_s27 }
  0x1b   :  { %p2298_p11 = scmp.ne.s32.totalorder %s29_s27, %s2297_s8  ;;  %p2303_p13 = scmp.lt.s32.totalorder %s2297_s8, %s2297_s8 }
  0x1d   :  { %p2304_p0 = por %p2303_p13, %p2302_p12 }
  0x1f   :  { %p2305_p1 = pnand %p2304_p0, %p2298_p11 }
  0x21   :  { %2308 = shalt.err (!%p2305_p1)
}
  0x22   :  { %s2341_s0 = smov 64   ;;  %s2342_s9 = smov 4  }
  0x23   :  { %34 = dma.hbm_to_vmem [thread:$0]  %s2578_s1, 2048, %s29_s27, [#allocation7], %s2341_s0, %s2341_s0, %s2342_s9  }
  0x24   :  { %2331 = dma.done.wait [#allocation4], 8192  }
  0x25   :  { %2332 = vsyncadd [#allocation4], 4294959104 }
  0x26   :  { %2333 = dma.done.wait [#allocation7], 2048  }
  0x27   :  { %2334 = vsyncadd [#allocation7], 4294965248  ;;  %v2343_v0 = vmov 0   ;;  %v2153_v1 = vld [vmem:[#allocation6] sm:$0xff]   ;;  %v2154_v2 = vld [vmem:[#allocation6 + $0x8] sm:$0xff]  }
  0x28   :  { %688 = vmatprep.subr.bf16.mxu0 %v2343_v0  ;;  %2113 = vmatprep.subr.bf16.mxu1 %v2343_v0  ;;  %v2155_v3 = vld [vmem:[#allocation6 + $0x10] sm:$0xff]   ;;  %v2156_v4 = vld [vmem:[#allocation6 + $0x18] sm:$0xff]   ;;  %v2157_v5 = vld [vmem:[#allocation6 + $0x20] sm:$0xff]  }
  0x29   :  { %689 = vmatpush1.bf16.msra.mxu0 %v2153_v1  ;;  %2129 = vmatpush1.bf16.msra.mxu1 %v2153_v1  ;;  %v2171_v6 = vld [vmem:[#allocation3 + $0x4] ss:$8 sps:$4 sm:$0xff]   ;;  %v2159_v9 = vld [vmem:[#allocation6 + $0x30] sm:$0xff]   ;;  %v2160_v10 = vld [vmem:[#allocation6 + $0x38] sm:$0xff]  }
  0x2a   :  { %690 = vmatprep.subr.bf16.mxu0 %v2343_v0  ;;  %2114 = vmatprep.subr.bf16.mxu1 %v2343_v0  ;;  %v2158_v7 = vld [vmem:[#allocation6 + $0x28] sm:$0xff]   ;;  %v2161_v11 = vld [vmem:[#allocation6 + $0x40] sm:$0xff]   ;;  %v2163_v13 = vld [vmem:[#allocation6 + $0x50] sm:$0xff]  }
  0x2b   :  { %v2174_v8 = vld [vmem:[#allocation3 + $0x104] ss:$8 sps:$4 sm:$0xff]   ;;  %720 = vmatprep.mubr.bf16.mxu0 %v2171_v6  ;;  %v2164_v14 = vld [vmem:[#allocation6 + $0x58] sm:$0xff]   ;;  %v2167_v17 = vld [vmem:[#allocation6 + $0x70] sm:$0xff]  }
  0x2c   :  { %848 = vmatprep.mubr.bf16.mxu1 %v2174_v8  ;;  %v2162_v12 = vld [vmem:[#allocation6 + $0x48] sm:$0xff]   ;;  %v2165_v15 = vld [vmem:[#allocation6 + $0x60] sm:$0xff]   ;;  %v2168_v18 = vld [vmem:[#allocation6 + $0x78] sm:$0xff]  }
  0x2d   :  { %691 = vmatpush1.bf16.msra.mxu0 %v2154_v2  ;;  %2130 = vmatpush1.bf16.msra.mxu1 %v2154_v2  ;;  %v2166_v16 = vld [vmem:[#allocation6 + $0x68] sm:$0xff]   ;;  %v2175_v21 = vld [vmem:[#allocation3 + $0x14] ss:$8 sps:$4 sm:$0xff]   ;;  %v2179_v23 = vld [vmem:[#allocation3 + $0x10] ss:$8 sps:$4 sm:$0xff]  }
  0x2e   :  { %692 = vmatprep.subr.bf16.mxu0 %v2343_v0  ;;  %2115 = vmatprep.subr.bf16.mxu1 %v2343_v0  ;;  %v2169_v19 = vld [vmem:[#allocation3] ss:$8 sps:$4 sm:$0xff]   ;;  %v2177_v22 = vld [vmem:[#allocation3 + $0x114] ss:$8 sps:$4 sm:$0xff]   ;;  %v2180_v24 = vld [vmem:[#allocation3 + $0x110] ss:$8 sps:$4 sm:$0xff]  }
  0x2f   :  { %v2172_v20 = vld [vmem:[#allocation3 + $0x100] ss:$8 sps:$4 sm:$0xff]   ;;  %v2181_v25 = vld [vmem:[#allocation3 + $0x24] ss:$8 sps:$4 sm:$0xff]   ;;  %v2187_v29 = vld [vmem:[#allocation3 + $0x34] ss:$8 sps:$4 sm:$0xff]  }
  0x30   :  { %v2183_v26 = vld [vmem:[#allocation3 + $0x124] ss:$8 sps:$4 sm:$0xff]   ;;  %v2185_v27 = vld [vmem:[#allocation3 + $0x20] ss:$8 sps:$4 sm:$0xff]   ;;  %v2189_v30 = vld [vmem:[#allocation3 + $0x134] ss:$8 sps:$4 sm:$0xff]  }
  0x31   :  { %693 = vmatpush1.bf16.msra.mxu0 %v2155_v3  ;;  %2131 = vmatpush1.bf16.msra.mxu1 %v2155_v3  ;;  %v2186_v28 = vld [vmem:[#allocation3 + $0x120] ss:$8 sps:$4 sm:$0xff]   ;;  %v2191_v31 = vld [vmem:[#allocation3 + $0x30] ss:$8 sps:$4 sm:$0xff]   ;;  %v2193_v33 = vld [vmem:[#allocation3 + $0x44] ss:$8 sps:$4 sm:$0xff]  }
  0x32   :  { %694 = vmatprep.subr.bf16.mxu0 %v2343_v0  ;;  %2116 = vmatprep.subr.bf16.mxu1 %v2343_v0  ;;  %v2192_v32 = vld [vmem:[#allocation3 + $0x130] ss:$8 sps:$4 sm:$0xff]   ;;  %v2195_v34 = vld [vmem:[#allocation3 + $0x144] ss:$8 sps:$4 sm:$0xff]   ;;  %v2197_v35 = vld [vmem:[#allocation3 + $0x40] ss:$8 sps:$4 sm:$0xff]  }
  0x33   :  { %v2198_v36 = vld [vmem:[#allocation3 + $0x140] ss:$8 sps:$4 sm:$0xff]   ;;  %v2199_v37 = vld [vmem:[#allocation3 + $0x54] ss:$8 sps:$4 sm:$0xff]   ;;  %v2203_v39 = vld [vmem:[#allocation3 + $0x50] ss:$8 sps:$4 sm:$0xff]  }
  0x34   :  { %v2201_v38 = vld [vmem:[#allocation3 + $0x154] ss:$8 sps:$4 sm:$0xff]   ;;  %v2204_v40 = vld [vmem:[#allocation3 + $0x150] ss:$8 sps:$4 sm:$0xff]   ;;  %v2205_v41 = vld [vmem:[#allocation3 + $0x64] ss:$8 sps:$4 sm:$0xff]  }
  0x35   :  { %695 = vmatpush1.bf16.msra.mxu0 %v2156_v4  ;;  %2132 = vmatpush1.bf16.msra.mxu1 %v2156_v4  ;;  %v2207_v42 = vld [vmem:[#allocation3 + $0x164] ss:$8 sps:$4 sm:$0xff]   ;;  %v2209_v43 = vld [vmem:[#allocation3 + $0x60] ss:$8 sps:$4 sm:$0xff]   ;;  %v2211_v45 = vld [vmem:[#allocation3 + $0x74] ss:$8 sps:$4 sm:$0xff]  }
  0x36   :  { %696 = vmatprep.subr.bf16.mxu0 %v2343_v0  ;;  %2117 = vmatprep.subr.bf16.mxu1 %v2343_v0  ;;  %v2210_v44 = vld [vmem:[#allocation3 + $0x160] ss:$8 sps:$4 sm:$0xff]   ;;  %v2213_v46 = vld [vmem:[#allocation3 + $0x174] ss:$8 sps:$4 sm:$0xff]   ;;  %v2215_v47 = vld [vmem:[#allocation3 + $0x70] ss:$8 sps:$4 sm:$0xff]  }
  0x37   :  { %v2216_v48 = vld [vmem:[#allocation3 + $0x170] ss:$8 sps:$4 sm:$0xff]   ;;  %v2217_v49 = vld [vmem:[#allocation3 + $0x84] ss:$8 sps:$4 sm:$0xff]   ;;  %v2221_v51 = vld [vmem:[#allocation3 + $0x80] ss:$8 sps:$4 sm:$0xff]  }
  0x38   :  { %v2219_v50 = vld [vmem:[#allocation3 + $0x184] ss:$8 sps:$4 sm:$0xff]   ;;  %v2222_v52 = vld [vmem:[#allocation3 + $0x180] ss:$8 sps:$4 sm:$0xff]   ;;  %v2223_v53 = vld [vmem:[#allocation3 + $0x94] ss:$8 sps:$4 sm:$0xff]  }
  0x39   :  { %697 = vmatpush1.bf16.msra.mxu0 %v2157_v5  ;;  %2133 = vmatpush1.bf16.msra.mxu1 %v2157_v5  ;;  %v2225_v54 = vld [vmem:[#allocation3 + $0x194] ss:$8 sps:$4 sm:$0xff]   ;;  %v2227_v55 = vld [vmem:[#allocation3 + $0x90] ss:$8 sps:$4 sm:$0xff]   ;;  %v2229_v57 = vld [vmem:[#allocation3 + $0xa4] ss:$8 sps:$4 sm:$0xff]  }
  0x3a   :  { %698 = vmatprep.subr.bf16.mxu0 %v2343_v0  ;;  %2118 = vmatprep.subr.bf16.mxu1 %v2343_v0  ;;  %v2228_v56 = vld [vmem:[#allocation3 + $0x190] ss:$8 sps:$4 sm:$0xff]   ;;  %v2231_v58 = vld [vmem:[#allocation3 + $0x1a4] ss:$8 sps:$4 sm:$0xff]   ;;  %v2233_v59 = vld [vmem:[#allocation3 + $0xa0] ss:$8 sps:$4 sm:$0xff]  }
  0x3b   :  { %v2234_v60 = vld [vmem:[#allocation3 + $0x1a0] ss:$8 sps:$4 sm:$0xff]   ;;  %v2235_v61 = vld [vmem:[#allocation3 + $0xb4] ss:$8 sps:$4 sm:$0xff]   ;;  %v2239_v63 = vld [vmem:[#allocation3 + $0xb0] ss:$8 sps:$4 sm:$0xff]  }
  0x3c   :  { %v2237_v62 = vld [vmem:[#allocation3 + $0x1b4] ss:$8 sps:$4 sm:$0xff]   ;;  %v2241_v1 = vld [vmem:[#allocation3 + $0xc4] ss:$8 sps:$4 sm:$0xff]   ;;  %v2245_v3 = vld [vmem:[#allocation3 + $0xc0] ss:$8 sps:$4 sm:$0xff]  }
  0x3d   :  { %699 = vmatpush1.bf16.msra.mxu0 %v2158_v7  ;;  %2134 = vmatpush1.bf16.msra.mxu1 %v2158_v7  ;;  %v2243_v2 = vld [vmem:[#allocation3 + $0x1c4] ss:$8 sps:$4 sm:$0xff]   ;;  %v2246_v4 = vld [vmem:[#allocation3 + $0x1c0] ss:$8 sps:$4 sm:$0xff]   ;;  %v2247_v5 = vld [vmem:[#allocation3 + $0xd4] ss:$8 sps:$4 sm:$0xff]  }
  0x3e   :  { %700 = vmatprep.subr.bf16.mxu0 %v2343_v0  ;;  %2119 = vmatprep.subr.bf16.mxu1 %v2343_v0  ;;  %v2249_v6 = vld [vmem:[#allocation3 + $0x1d4] ss:$8 sps:$4 sm:$0xff]   ;;  %v2251_v7 = vld [vmem:[#allocation3 + $0xd0] ss:$8 sps:$4 sm:$0xff]  }
  0x3f   :  { %v2252_v8 = vld [vmem:[#allocation3 + $0x1d0] ss:$8 sps:$4 sm:$0xff]  }
  0x41   :  { %701 = vmatpush1.bf16.msra.mxu0 %v2159_v9  ;;  %2135 = vmatpush1.bf16.msra.mxu1 %v2159_v9  ;;  %v2253_v9 = vld [vmem:[#allocation3 + $0xe4] ss:$8 sps:$4 sm:$0xff]  }
  0x42   :  { %702 = vmatprep.subr.bf16.mxu0 %v2343_v0  ;;  %2120 = vmatprep.subr.bf16.mxu1 %v2343_v0 }
  0x45   :  { %703 = vmatpush1.bf16.msra.mxu0 %v2160_v10  ;;  %2136 = vmatpush1.bf16.msra.mxu1 %v2160_v10  ;;  %v2255_v10 = vld [vmem:[#allocation3 + $0x1e4] ss:$8 sps:$4 sm:$0xff]  }
  0x46   :  { %704 = vmatprep.subr.bf16.mxu0 %v2343_v0  ;;  %2121 = vmatprep.subr.bf16.mxu1 %v2343_v0 }
  0x49   :  { %705 = vmatpush1.bf16.msra.mxu0 %v2161_v11  ;;  %2137 = vmatpush1.bf16.msra.mxu1 %v2161_v11  ;;  %v2257_v11 = vld [vmem:[#allocation3 + $0xe0] ss:$8 sps:$4 sm:$0xff]  }
  0x4a   :  { %706 = vmatprep.subr.bf16.mxu0 %v2343_v0  ;;  %2122 = vmatprep.subr.bf16.mxu1 %v2343_v0 }
  0x4d   :  { %707 = vmatpush1.bf16.msra.mxu0 %v2162_v12  ;;  %2138 = vmatpush1.bf16.msra.mxu1 %v2162_v12  ;;  %v2258_v12 = vld [vmem:[#allocation3 + $0x1e0] ss:$8 sps:$4 sm:$0xff]  }
  0x4e   :  { %708 = vmatprep.subr.bf16.mxu0 %v2343_v0  ;;  %2123 = vmatprep.subr.bf16.mxu1 %v2343_v0 }
  0x51   :  { %709 = vmatpush1.bf16.msra.mxu0 %v2163_v13  ;;  %2139 = vmatpush1.bf16.msra.mxu1 %v2163_v13  ;;  %v2259_v13 = vld [vmem:[#allocation3 + $0xf4] ss:$8 sps:$4 sm:$0xff]  }
  0x52   :  { %710 = vmatprep.subr.bf16.mxu0 %v2343_v0  ;;  %2124 = vmatprep.subr.bf16.mxu1 %v2343_v0 }
  0x55   :  { %711 = vmatpush1.bf16.msra.mxu0 %v2164_v14  ;;  %2140 = vmatpush1.bf16.msra.mxu1 %v2164_v14  ;;  %v2261_v14 = vld [vmem:[#allocation3 + $0x1f4] ss:$8 sps:$4 sm:$0xff]  }
  0x56   :  { %712 = vmatprep.subr.bf16.mxu0 %v2343_v0  ;;  %2125 = vmatprep.subr.bf16.mxu1 %v2343_v0 }
  0x59   :  { %713 = vmatpush1.bf16.msra.mxu0 %v2165_v15  ;;  %2141 = vmatpush1.bf16.msra.mxu1 %v2165_v15  ;;  %v2263_v15 = vld [vmem:[#allocation3 + $0xf0] ss:$8 sps:$4 sm:$0xff]  }
  0x5a   :  { %714 = vmatprep.subr.bf16.mxu0 %v2343_v0  ;;  %2126 = vmatprep.subr.bf16.mxu1 %v2343_v0 }
  0x5d   :  { %715 = vmatpush1.bf16.msra.mxu0 %v2166_v16  ;;  %2142 = vmatpush1.bf16.msra.mxu1 %v2166_v16  ;;  %v2264_v16 = vld [vmem:[#allocation3 + $0x1f0] ss:$8 sps:$4 sm:$0xff]  }
  0x5e   :  { %716 = vmatprep.subr.bf16.mxu0 %v2343_v0  ;;  %2127 = vmatprep.subr.bf16.mxu1 %v2343_v0 }
  0x61   :  { %717 = vmatpush1.bf16.msra.mxu0 %v2167_v17  ;;  %2143 = vmatpush1.bf16.msra.mxu1 %v2167_v17  ;;  %v2427_v17 = vld [vmem:[%s2579_s2] ss:$0 sm:$0xff] }
  0x62   :  { %718 = vmatprep.subr.bf16.mxu0 %v2343_v0  ;;  %2128 = vmatprep.subr.bf16.mxu1 %v2343_v0  ;;  %v2240_v0 = vld [vmem:[#allocation3 + $0x1b0] ss:$8 sps:$4 sm:$0xff]  }
  0x65   :  { %719 = vmatpush1.bf16.msra.mxu0 %v2168_v18  ;;  %2144 = vmatpush1.bf16.msra.mxu1 %v2168_v18 }
  0x68   :  { %721 = vmatmul.mubr.bf16.vlgmr.msra.gmra.mrb[0].mxu0 %v2169_v19  ;;  %849 = vmatmul.mubr.bf16.vlgmr.msra.gmra.mrb[0].mxu1 %v2172_v20  ;;  %v2432_v19 = vld [vmem:[%s2579_s2 + $0x1] ss:$0 sm:$0xff]  ;;  %s2344_s2 = smov [#allocation8]  }
  0x69   :  { %728 = vmatprep.mubr.bf16.mxu0 %v2175_v21  ;;  %856 = vmatprep.mubr.bf16.mxu1 %v2177_v22  ;;  %s1699_s15 = sshll.u32 %s2344_s2, 4  ;;  %s1700_s15 = int_to_ptr.vmem [resolvable:$true] %s1699_s15 }
  0x6a   :  { %s2309_s16 = scalar_lea.vmem %s1700_s15, 4096  ;;  %p2314_p3 = scmp.lt.s32.totalorder %s1700_s15, %s1700_s15 }
  0x6b   :  { %p2310_p2 = scmp.ne.s32.totalorder %s1700_s15, %s2309_s16  ;;  %p2315_p4 = scmp.lt.s32.totalorder %s2309_s16, %s2309_s16 }
  0x6d   :  { %p2316_p5 = por %p2315_p4, %p2314_p3 }
  0x6f   :  { %p2317_p6 = pnand %p2316_p5, %p2310_p2 }
  0x70   :  { %729 = vmatmul.mubr.bf16.gmra.mrb[4].mxu0 %v2179_v23  ;;  %857 = vmatmul.mubr.bf16.gmra.mrb[4].mxu1 %v2180_v24 }
  0x71   :  { %736 = vmatprep.mubr.bf16.mxu0 %v2181_v25  ;;  %864 = vmatprep.mubr.bf16.mxu1 %v2183_v26 }
  0x78   :  { %737 = vmatmul.mubr.bf16.gmra.mrb[8].mxu0 %v2185_v27  ;;  %865 = vmatmul.mubr.bf16.gmra.mrb[8].mxu1 %v2186_v28 }
  0x79   :  { %744 = vmatprep.mubr.bf16.mxu0 %v2187_v29  ;;  %872 = vmatprep.mubr.bf16.mxu1 %v2189_v30 }
  0x80   :  { %745 = vmatmul.mubr.bf16.gmra.mrb[12].mxu0 %v2191_v31  ;;  %873 = vmatmul.mubr.bf16.gmra.mrb[12].mxu1 %v2192_v32 }
  0x81   :  { %752 = vmatprep.mubr.bf16.mxu0 %v2193_v33  ;;  %880 = vmatprep.mubr.bf16.mxu1 %v2195_v34 }
  0x88   :  { %753 = vmatmul.mubr.bf16.gmra.mrb[16].mxu0 %v2197_v35  ;;  %881 = vmatmul.mubr.bf16.gmra.mrb[16].mxu1 %v2198_v36 }
  0x89   :  { %760 = vmatprep.mubr.bf16.mxu0 %v2199_v37  ;;  %888 = vmatprep.mubr.bf16.mxu1 %v2201_v38 }
  0x90   :  { %761 = vmatmul.mubr.bf16.gmra.mrb[20].mxu0 %v2203_v39  ;;  %889 = vmatmul.mubr.bf16.gmra.mrb[20].mxu1 %v2204_v40 }
  0x91   :  { %768 = vmatprep.mubr.bf16.mxu0 %v2205_v41  ;;  %896 = vmatprep.mubr.bf16.mxu1 %v2207_v42 }
  0x98   :  { %769 = vmatmul.mubr.bf16.gmra.mrb[24].mxu0 %v2209_v43  ;;  %897 = vmatmul.mubr.bf16.gmra.mrb[24].mxu1 %v2210_v44 }
  0x99   :  { %776 = vmatprep.mubr.bf16.mxu0 %v2211_v45  ;;  %904 = vmatprep.mubr.bf16.mxu1 %v2213_v46 }
  0xa0   :  { %777 = vmatmul.mubr.bf16.gmra.mrb[28].mxu0 %v2215_v47  ;;  %905 = vmatmul.mubr.bf16.gmra.mrb[28].mxu1 %v2216_v48 }
  0xa1   :  { %784 = vmatprep.mubr.bf16.mxu0 %v2217_v49  ;;  %912 = vmatprep.mubr.bf16.mxu1 %v2219_v50 }
  0xa8   :  { %785 = vmatmul.mubr.bf16.gmra.mrb[32].mxu0 %v2221_v51  ;;  %913 = vmatmul.mubr.bf16.gmra.mrb[32].mxu1 %v2222_v52 }
  0xa9   :  { %792 = vmatprep.mubr.bf16.mxu0 %v2223_v53  ;;  %920 = vmatprep.mubr.bf16.mxu1 %v2225_v54 }
  0xb0   :  { %793 = vmatmul.mubr.bf16.gmra.mrb[36].mxu0 %v2227_v55  ;;  %921 = vmatmul.mubr.bf16.gmra.mrb[36].mxu1 %v2228_v56 }
  0xb1   :  { %800 = vmatprep.mubr.bf16.mxu0 %v2229_v57  ;;  %928 = vmatprep.mubr.bf16.mxu1 %v2231_v58 }
  0xb8   :  { %801 = vmatmul.mubr.bf16.gmra.mrb[40].mxu0 %v2233_v59  ;;  %929 = vmatmul.mubr.bf16.gmra.mrb[40].mxu1 %v2234_v60 }
  0xb9   :  { %808 = vmatprep.mubr.bf16.mxu0 %v2235_v61  ;;  %936 = vmatprep.mubr.bf16.mxu1 %v2237_v62 }
  0xc0   :  { %809 = vmatmul.mubr.bf16.gmra.mrb[44].mxu0 %v2239_v63  ;;  %937 = vmatmul.mubr.bf16.gmra.mrb[44].mxu1 %v2240_v0 }
  0xc1   :  { %816 = vmatprep.mubr.bf16.mxu0 %v2241_v1  ;;  %944 = vmatprep.mubr.bf16.mxu1 %v2243_v2 }
  0xc8   :  { %817 = vmatmul.mubr.bf16.gmra.mrb[48].mxu0 %v2245_v3  ;;  %945 = vmatmul.mubr.bf16.gmra.mrb[48].mxu1 %v2246_v4 }
  0xc9   :  { %824 = vmatprep.mubr.bf16.mxu0 %v2247_v5  ;;  %952 = vmatprep.mubr.bf16.mxu1 %v2249_v6 }
  0xd0   :  { %825 = vmatmul.mubr.bf16.gmra.mrb[52].mxu0 %v2251_v7  ;;  %953 = vmatmul.mubr.bf16.gmra.mrb[52].mxu1 %v2252_v8 }
  0xd1   :  { %832 = vmatprep.mubr.bf16.mxu0 %v2253_v9  ;;  %960 = vmatprep.mubr.bf16.mxu1 %v2255_v10 }
  0xd8   :  { %833 = vmatmul.mubr.bf16.gmra.mrb[56].mxu0 %v2257_v11  ;;  %961 = vmatmul.mubr.bf16.gmra.mrb[56].mxu1 %v2258_v12 }
  0xd9   :  { %840 = vmatprep.mubr.bf16.mxu0 %v2259_v13  ;;  %968 = vmatprep.mubr.bf16.mxu1 %v2261_v14 }
  0xe0   :  { %841 = vmatmul.mubr.bf16.gmra.mrb[60].mxu0 %v2263_v15  ;;  %969 = vmatmul.mubr.bf16.gmra.mrb[60].mxu1 %v2264_v16 }
 0x13b   :  { %v722_v18 = vpop.f32.mrb[0].mxu0  ;;  %v850_v20 = vpop.f32.mrb[0].mxu1 }
 0x13c   :  { %v1177_v21 = vmul.f32 %v2427_v17, %v722_v18  ;;  %v1209_v22 = vmul.f32 %v2427_v17, %v850_v20  ;;  %v724_v23 = vpop.f32.mrb[1].mxu0  ;;  %v852_v24 = vpop.f32.mrb[1].mxu1 }
 0x13d   :  { %v725_v25 = vpop.f32.mrb[2].mxu0  ;;  %v853_v26 = vpop.f32.mrb[2].mxu1 }
 0x13e   :  { %v1246_v27 = vadd.f32 %v2432_v19, %v1177_v21  ;;  %v1278_v28 = vadd.f32 %v2432_v19, %v1209_v22  ;;  %v1178_v29 = vmul.f32 %v2427_v17, %v725_v25  ;;  %v1210_v30 = vmul.f32 %v2427_v17, %v853_v26  ;;  %v727_v31 = vpop.f32.mrb[3].mxu0  ;;  %v855_v32 = vpop.f32.mrb[3].mxu1 }
 0x140   :  { %v1247_v33 = vadd.f32 %v2432_v19, %v1178_v29  ;;  %v1279_v34 = vadd.f32 %v2432_v19, %v1210_v30  ;;  %v1310_v35 = vmax.f32 %v1246_v27, 0.0  ;;  %v1342_v36 = vmax.f32 %v1278_v28, 0.0 }
 0x142   :  { %v1311_v37 = vmax.f32 %v1247_v33, 0.0  ;;  %v1343_v38 = vmax.f32 %v1279_v34, 0.0 }
 0x143   :  { %v730_v39 = vpop.f32.mrb[4].mxu0  ;;  %v858_v40 = vpop.f32.mrb[4].mxu1 }
 0x144   :  { %v1925_v41 = vpack.c.bf16 %v1311_v37, %v1310_v35  ;;  %v2005_v42 = vpack.c.bf16 %v1343_v38, %v1342_v36  ;;  %v1179_v43 = vmul.f32 %v2427_v17, %v730_v39  ;;  %v1211_v44 = vmul.f32 %v2427_v17, %v858_v40  ;;  %v732_v45 = vpop.f32.mrb[5].mxu0  ;;  %v860_v46 = vpop.f32.mrb[5].mxu1 }
 0x145   :  { %v733_v47 = vpop.f32.mrb[6].mxu0  ;;  %v861_v48 = vpop.f32.mrb[6].mxu1 }
 0x146   :  { %1926 = vst [vmem:[#allocation8] sm:$0xff] %v1925_v41   ;;  %2097 = vst [vmem:[#allocation8 + $0x80] sm:$0xff] %v2005_v42   ;;  %v1248_v49 = vadd.f32 %v2432_v19, %v1179_v43  ;;  %v1280_v50 = vadd.f32 %v2432_v19, %v1211_v44  ;;  %v1180_v51 = vmul.f32 %v2427_v17, %v733_v47  ;;  %v735_v53 = vpop.f32.mrb[7].mxu0  ;;  %v863_v54 = vpop.f32.mrb[7].mxu1 }
 0x147   :  { %v1212_v52 = vmul.f32 %v2427_v17, %v861_v48 }
 0x148   :  { %v1249_v55 = vadd.f32 %v2432_v19, %v1180_v51  ;;  %v1312_v57 = vmax.f32 %v1248_v49, 0.0  ;;  %v1344_v58 = vmax.f32 %v1280_v50, 0.0 }
 0x149   :  { %v1281_v56 = vadd.f32 %v2432_v19, %v1212_v52 }
 0x14a   :  { %v1313_v59 = vmax.f32 %v1249_v55, 0.0 }
 0x14b   :  { %v1345_v60 = vmax.f32 %v1281_v56, 0.0  ;;  %v738_v61 = vpop.f32.mrb[8].mxu0  ;;  %v866_v62 = vpop.f32.mrb[8].mxu1 }
 0x14c   :  { %v1930_v63 = vpack.c.bf16 %v1313_v59, %v1312_v57  ;;  %v1181_v1 = vmul.f32 %v2427_v17, %v738_v61  ;;  %v1213_v2 = vmul.f32 %v2427_v17, %v866_v62  ;;  %v740_v3 = vpop.f32.mrb[9].mxu0  ;;  %v868_v4 = vpop.f32.mrb[9].mxu1 }
 0x14d   :  { %v2010_v0 = vpack.c.bf16 %v1345_v60, %v1344_v58  ;;  %v741_v5 = vpop.f32.mrb[10].mxu0  ;;  %v869_v6 = vpop.f32.mrb[10].mxu1 }
 0x14e   :  { %2082 = vst [vmem:[#allocation8 + $0x8] sm:$0xff] %v1930_v63   ;;  %v1250_v7 = vadd.f32 %v2432_v19, %v1181_v1  ;;  %v1282_v8 = vadd.f32 %v2432_v19, %v1213_v2  ;;  %v1182_v9 = vmul.f32 %v2427_v17, %v741_v5  ;;  %v1214_v10 = vmul.f32 %v2427_v17, %v869_v6  ;;  %v743_v11 = vpop.f32.mrb[11].mxu0  ;;  %v871_v12 = vpop.f32.mrb[11].mxu1 }
 0x14f   :  { %2098 = vst [vmem:[#allocation8 + $0x88] sm:$0xff] %v2010_v0  }
 0x150   :  { %v1251_v13 = vadd.f32 %v2432_v19, %v1182_v9  ;;  %v1283_v14 = vadd.f32 %v2432_v19, %v1214_v10  ;;  %v1314_v15 = vmax.f32 %v1250_v7, 0.0  ;;  %v1346_v16 = vmax.f32 %v1282_v8, 0.0 }
 0x152   :  { %v1315_v18 = vmax.f32 %v1251_v13, 0.0  ;;  %v1347_v20 = vmax.f32 %v1283_v14, 0.0 }
 0x153   :  { %v746_v21 = vpop.f32.mrb[12].mxu0  ;;  %v874_v22 = vpop.f32.mrb[12].mxu1 }
 0x154   :  { %v1935_v23 = vpack.c.bf16 %v1315_v18, %v1314_v15  ;;  %v2015_v24 = vpack.c.bf16 %v1347_v20, %v1346_v16  ;;  %v1183_v25 = vmul.f32 %v2427_v17, %v746_v21  ;;  %v1215_v26 = vmul.f32 %v2427_v17, %v874_v22  ;;  %v748_v27 = vpop.f32.mrb[13].mxu0  ;;  %v876_v28 = vpop.f32.mrb[13].mxu1 }
 0x155   :  { %v749_v29 = vpop.f32.mrb[14].mxu0  ;;  %v877_v30 = vpop.f32.mrb[14].mxu1 }
 0x156   :  { %2083 = vst [vmem:[#allocation8 + $0x10] sm:$0xff] %v1935_v23   ;;  %2099 = vst [vmem:[#allocation8 + $0x90] sm:$0xff] %v2015_v24   ;;  %v1252_v31 = vadd.f32 %v2432_v19, %v1183_v25  ;;  %v1284_v32 = vadd.f32 %v2432_v19, %v1215_v26  ;;  %v1184_v33 = vmul.f32 %v2427_v17, %v749_v29  ;;  %v751_v35 = vpop.f32.mrb[15].mxu0  ;;  %v879_v36 = vpop.f32.mrb[15].mxu1 }
 0x157   :  { %v1216_v34 = vmul.f32 %v2427_v17, %v877_v30 }
 0x158   :  { %v1253_v37 = vadd.f32 %v2432_v19, %v1184_v33  ;;  %v1316_v39 = vmax.f32 %v1252_v31, 0.0  ;;  %v1348_v40 = vmax.f32 %v1284_v32, 0.0 }
 0x159   :  { %v1285_v38 = vadd.f32 %v2432_v19, %v1216_v34 }
 0x15a   :  { %v1317_v41 = vmax.f32 %v1253_v37, 0.0 }
 0x15b   :  { %v1349_v42 = vmax.f32 %v1285_v38, 0.0  ;;  %v754_v43 = vpop.f32.mrb[16].mxu0  ;;  %v882_v44 = vpop.f32.mrb[16].mxu1 }
 0x15c   :  { %v1940_v45 = vpack.c.bf16 %v1317_v41, %v1316_v39  ;;  %v1185_v47 = vmul.f32 %v2427_v17, %v754_v43  ;;  %v1217_v48 = vmul.f32 %v2427_v17, %v882_v44  ;;  %v756_v49 = vpop.f32.mrb[17].mxu0  ;;  %v884_v50 = vpop.f32.mrb[17].mxu1 }
 0x15d   :  { %v2020_v46 = vpack.c.bf16 %v1349_v42, %v1348_v40  ;;  %v757_v51 = vpop.f32.mrb[18].mxu0  ;;  %v885_v52 = vpop.f32.mrb[18].mxu1 }
 0x15e   :  { %2084 = vst [vmem:[#allocation8 + $0x18] sm:$0xff] %v1940_v45   ;;  %v1254_v53 = vadd.f32 %v2432_v19, %v1185_v47  ;;  %v1286_v54 = vadd.f32 %v2432_v19, %v1217_v48  ;;  %v1186_v55 = vmul.f32 %v2427_v17, %v757_v51  ;;  %v1218_v56 = vmul.f32 %v2427_v17, %v885_v52  ;;  %v759_v57 = vpop.f32.mrb[19].mxu0  ;;  %v887_v58 = vpop.f32.mrb[19].mxu1 }
 0x15f   :  { %2100 = vst [vmem:[#allocation8 + $0x98] sm:$0xff] %v2020_v46  }
 0x160   :  { %v1255_v59 = vadd.f32 %v2432_v19, %v1186_v55  ;;  %v1287_v60 = vadd.f32 %v2432_v19, %v1218_v56  ;;  %v1318_v61 = vmax.f32 %v1254_v53, 0.0  ;;  %v1350_v62 = vmax.f32 %v1286_v54, 0.0 }
 0x162   :  { %v1319_v63 = vmax.f32 %v1255_v59, 0.0  ;;  %v1351_v0 = vmax.f32 %v1287_v60, 0.0 }
 0x163   :  { %v762_v1 = vpop.f32.mrb[20].mxu0  ;;  %v890_v2 = vpop.f32.mrb[20].mxu1 }
 0x164   :  { %v1945_v3 = vpack.c.bf16 %v1319_v63, %v1318_v61  ;;  %v2025_v4 = vpack.c.bf16 %v1351_v0, %v1350_v62  ;;  %v1187_v5 = vmul.f32 %v2427_v17, %v762_v1  ;;  %v1219_v6 = vmul.f32 %v2427_v17, %v890_v2  ;;  %v764_v7 = vpop.f32.mrb[21].mxu0  ;;  %v892_v8 = vpop.f32.mrb[21].mxu1 }
 0x165   :  { %v765_v9 = vpop.f32.mrb[22].mxu0  ;;  %v893_v10 = vpop.f32.mrb[22].mxu1 }
 0x166   :  { %2085 = vst [vmem:[#allocation8 + $0x20] sm:$0xff] %v1945_v3   ;;  %2101 = vst [vmem:[#allocation8 + $0xa0] sm:$0xff] %v2025_v4   ;;  %v1256_v11 = vadd.f32 %v2432_v19, %v1187_v5  ;;  %v1288_v12 = vadd.f32 %v2432_v19, %v1219_v6  ;;  %v1188_v13 = vmul.f32 %v2427_v17, %v765_v9  ;;  %v767_v15 = vpop.f32.mrb[23].mxu0  ;;  %v895_v16 = vpop.f32.mrb[23].mxu1 }
 0x167   :  { %v1220_v14 = vmul.f32 %v2427_v17, %v893_v10 }
 0x168   :  { %v1257_v18 = vadd.f32 %v2432_v19, %v1188_v13  ;;  %v1320_v21 = vmax.f32 %v1256_v11, 0.0  ;;  %v1352_v22 = vmax.f32 %v1288_v12, 0.0 }
 0x169   :  { %v1289_v20 = vadd.f32 %v2432_v19, %v1220_v14 }
 0x16a   :  { %v1321_v23 = vmax.f32 %v1257_v18, 0.0 }
 0x16b   :  { %v1353_v24 = vmax.f32 %v1289_v20, 0.0  ;;  %v770_v25 = vpop.f32.mrb[24].mxu0  ;;  %v898_v26 = vpop.f32.mrb[24].mxu1 }
 0x16c   :  { %v1950_v27 = vpack.c.bf16 %v1321_v23, %v1320_v21  ;;  %v1189_v29 = vmul.f32 %v2427_v17, %v770_v25  ;;  %v1221_v30 = vmul.f32 %v2427_v17, %v898_v26  ;;  %v772_v31 = vpop.f32.mrb[25].mxu0  ;;  %v900_v32 = vpop.f32.mrb[25].mxu1 }
 0x16d   :  { %v2030_v28 = vpack.c.bf16 %v1353_v24, %v1352_v22  ;;  %v773_v33 = vpop.f32.mrb[26].mxu0  ;;  %v901_v34 = vpop.f32.mrb[26].mxu1 }
 0x16e   :  { %2086 = vst [vmem:[#allocation8 + $0x28] sm:$0xff] %v1950_v27   ;;  %v1258_v35 = vadd.f32 %v2432_v19, %v1189_v29  ;;  %v1290_v36 = vadd.f32 %v2432_v19, %v1221_v30  ;;  %v1190_v37 = vmul.f32 %v2427_v17, %v773_v33  ;;  %v1222_v38 = vmul.f32 %v2427_v17, %v901_v34  ;;  %v775_v39 = vpop.f32.mrb[27].mxu0  ;;  %v903_v40 = vpop.f32.mrb[27].mxu1 }
 0x16f   :  { %2102 = vst [vmem:[#allocation8 + $0xa8] sm:$0xff] %v2030_v28  }
 0x170   :  { %v1259_v41 = vadd.f32 %v2432_v19, %v1190_v37  ;;  %v1291_v42 = vadd.f32 %v2432_v19, %v1222_v38  ;;  %v1322_v43 = vmax.f32 %v1258_v35, 0.0  ;;  %v1354_v44 = vmax.f32 %v1290_v36, 0.0 }
 0x172   :  { %v1323_v45 = vmax.f32 %v1259_v41, 0.0  ;;  %v1355_v46 = vmax.f32 %v1291_v42, 0.0 }
 0x173   :  { %v778_v47 = vpop.f32.mrb[28].mxu0  ;;  %v906_v48 = vpop.f32.mrb[28].mxu1 }
 0x174   :  { %v1955_v49 = vpack.c.bf16 %v1323_v45, %v1322_v43  ;;  %v2035_v50 = vpack.c.bf16 %v1355_v46, %v1354_v44  ;;  %v1191_v51 = vmul.f32 %v2427_v17, %v778_v47  ;;  %v1223_v52 = vmul.f32 %v2427_v17, %v906_v48  ;;  %v780_v53 = vpop.f32.mrb[29].mxu0  ;;  %v908_v54 = vpop.f32.mrb[29].mxu1 }
 0x175   :  { %v781_v55 = vpop.f32.mrb[30].mxu0  ;;  %v909_v56 = vpop.f32.mrb[30].mxu1 }
 0x176   :  { %2087 = vst [vmem:[#allocation8 + $0x30] sm:$0xff] %v1955_v49   ;;  %2103 = vst [vmem:[#allocation8 + $0xb0] sm:$0xff] %v2035_v50   ;;  %v1260_v57 = vadd.f32 %v2432_v19, %v1191_v51  ;;  %v1292_v58 = vadd.f32 %v2432_v19, %v1223_v52  ;;  %v1192_v59 = vmul.f32 %v2427_v17, %v781_v55  ;;  %v783_v61 = vpop.f32.mrb[31].mxu0  ;;  %v911_v62 = vpop.f32.mrb[31].mxu1 }
 0x177   :  { %v1224_v60 = vmul.f32 %v2427_v17, %v909_v56 }
 0x178   :  { %v1261_v63 = vadd.f32 %v2432_v19, %v1192_v59  ;;  %v1324_v1 = vmax.f32 %v1260_v57, 0.0  ;;  %v1356_v2 = vmax.f32 %v1292_v58, 0.0 }
 0x179   :  { %v1293_v0 = vadd.f32 %v2432_v19, %v1224_v60 }
 0x17a   :  { %v1325_v3 = vmax.f32 %v1261_v63, 0.0 }
 0x17b   :  { %v1357_v4 = vmax.f32 %v1293_v0, 0.0  ;;  %v786_v5 = vpop.f32.mrb[32].mxu0  ;;  %v914_v6 = vpop.f32.mrb[32].mxu1 }
 0x17c   :  { %v1960_v7 = vpack.c.bf16 %v1325_v3, %v1324_v1  ;;  %v1193_v9 = vmul.f32 %v2427_v17, %v786_v5  ;;  %v1225_v10 = vmul.f32 %v2427_v17, %v914_v6  ;;  %v788_v11 = vpop.f32.mrb[33].mxu0  ;;  %v916_v12 = vpop.f32.mrb[33].mxu1 }
 0x17d   :  { %v2040_v8 = vpack.c.bf16 %v1357_v4, %v1356_v2  ;;  %v789_v13 = vpop.f32.mrb[34].mxu0  ;;  %v917_v14 = vpop.f32.mrb[34].mxu1 }
 0x17e   :  { %2088 = vst [vmem:[#allocation8 + $0x38] sm:$0xff] %v1960_v7   ;;  %v1262_v15 = vadd.f32 %v2432_v19, %v1193_v9  ;;  %v1294_v16 = vadd.f32 %v2432_v19, %v1225_v10  ;;  %v1194_v18 = vmul.f32 %v2427_v17, %v789_v13  ;;  %v1226_v20 = vmul.f32 %v2427_v17, %v917_v14  ;;  %v791_v21 = vpop.f32.mrb[35].mxu0  ;;  %v919_v22 = vpop.f32.mrb[35].mxu1 }
 0x17f   :  { %2104 = vst [vmem:[#allocation8 + $0xb8] sm:$0xff] %v2040_v8  }
 0x180   :  { %v1263_v23 = vadd.f32 %v2432_v19, %v1194_v18  ;;  %v1295_v24 = vadd.f32 %v2432_v19, %v1226_v20  ;;  %v1326_v25 = vmax.f32 %v1262_v15, 0.0  ;;  %v1358_v26 = vmax.f32 %v1294_v16, 0.0 }
 0x182   :  { %v1327_v27 = vmax.f32 %v1263_v23, 0.0  ;;  %v1359_v28 = vmax.f32 %v1295_v24, 0.0 }
 0x183   :  { %v794_v29 = vpop.f32.mrb[36].mxu0  ;;  %v922_v30 = vpop.f32.mrb[36].mxu1 }
 0x184   :  { %v1965_v31 = vpack.c.bf16 %v1327_v27, %v1326_v25  ;;  %v2045_v32 = vpack.c.bf16 %v1359_v28, %v1358_v26  ;;  %v1195_v33 = vmul.f32 %v2427_v17, %v794_v29  ;;  %v1227_v34 = vmul.f32 %v2427_v17, %v922_v30  ;;  %v796_v35 = vpop.f32.mrb[37].mxu0  ;;  %v924_v36 = vpop.f32.mrb[37].mxu1 }
 0x185   :  { %v797_v37 = vpop.f32.mrb[38].mxu0  ;;  %v925_v38 = vpop.f32.mrb[38].mxu1 }
 0x186   :  { %2089 = vst [vmem:[#allocation8 + $0x40] sm:$0xff] %v1965_v31   ;;  %2105 = vst [vmem:[#allocation8 + $0xc0] sm:$0xff] %v2045_v32   ;;  %v1264_v39 = vadd.f32 %v2432_v19, %v1195_v33  ;;  %v1296_v40 = vadd.f32 %v2432_v19, %v1227_v34  ;;  %v1196_v41 = vmul.f32 %v2427_v17, %v797_v37  ;;  %v799_v43 = vpop.f32.mrb[39].mxu0  ;;  %v927_v44 = vpop.f32.mrb[39].mxu1 }
 0x187   :  { %v1228_v42 = vmul.f32 %v2427_v17, %v925_v38 }
 0x188   :  { %v1265_v45 = vadd.f32 %v2432_v19, %v1196_v41  ;;  %v1328_v47 = vmax.f32 %v1264_v39, 0.0  ;;  %v1360_v48 = vmax.f32 %v1296_v40, 0.0 }
 0x189   :  { %v1297_v46 = vadd.f32 %v2432_v19, %v1228_v42 }
 0x18a   :  { %v1329_v49 = vmax.f32 %v1265_v45, 0.0 }
 0x18b   :  { %v1361_v50 = vmax.f32 %v1297_v46, 0.0  ;;  %v802_v51 = vpop.f32.mrb[40].mxu0  ;;  %v930_v52 = vpop.f32.mrb[40].mxu1 }
 0x18c   :  { %v1970_v53 = vpack.c.bf16 %v1329_v49, %v1328_v47  ;;  %v1197_v55 = vmul.f32 %v2427_v17, %v802_v51  ;;  %v1229_v56 = vmul.f32 %v2427_v17, %v930_v52  ;;  %v804_v57 = vpop.f32.mrb[41].mxu0  ;;  %v932_v58 = vpop.f32.mrb[41].mxu1 }
 0x18d   :  { %v2050_v54 = vpack.c.bf16 %v1361_v50, %v1360_v48  ;;  %v805_v59 = vpop.f32.mrb[42].mxu0  ;;  %v933_v60 = vpop.f32.mrb[42].mxu1 }
 0x18e   :  { %2090 = vst [vmem:[#allocation8 + $0x48] sm:$0xff] %v1970_v53   ;;  %v1266_v61 = vadd.f32 %v2432_v19, %v1197_v55  ;;  %v1298_v62 = vadd.f32 %v2432_v19, %v1229_v56  ;;  %v1198_v63 = vmul.f32 %v2427_v17, %v805_v59  ;;  %v1230_v0 = vmul.f32 %v2427_v17, %v933_v60  ;;  %v807_v1 = vpop.f32.mrb[43].mxu0  ;;  %v935_v2 = vpop.f32.mrb[43].mxu1 }
 0x18f   :  { %2106 = vst [vmem:[#allocation8 + $0xc8] sm:$0xff] %v2050_v54  }
 0x190   :  { %v1267_v3 = vadd.f32 %v2432_v19, %v1198_v63  ;;  %v1299_v4 = vadd.f32 %v2432_v19, %v1230_v0  ;;  %v1330_v5 = vmax.f32 %v1266_v61, 0.0  ;;  %v1362_v6 = vmax.f32 %v1298_v62, 0.0 }
 0x192   :  { %v1331_v7 = vmax.f32 %v1267_v3, 0.0  ;;  %v1363_v8 = vmax.f32 %v1299_v4, 0.0 }
 0x193   :  { %v810_v9 = vpop.f32.mrb[44].mxu0  ;;  %v938_v10 = vpop.f32.mrb[44].mxu1 }
 0x194   :  { %v1975_v11 = vpack.c.bf16 %v1331_v7, %v1330_v5  ;;  %v2055_v12 = vpack.c.bf16 %v1363_v8, %v1362_v6  ;;  %v1199_v13 = vmul.f32 %v2427_v17, %v810_v9  ;;  %v1231_v14 = vmul.f32 %v2427_v17, %v938_v10  ;;  %v812_v15 = vpop.f32.mrb[45].mxu0  ;;  %v940_v16 = vpop.f32.mrb[45].mxu1 }
 0x195   :  { %v813_v18 = vpop.f32.mrb[46].mxu0  ;;  %v941_v20 = vpop.f32.mrb[46].mxu1 }
 0x196   :  { %2091 = vst [vmem:[#allocation8 + $0x50] sm:$0xff] %v1975_v11   ;;  %2107 = vst [vmem:[#allocation8 + $0xd0] sm:$0xff] %v2055_v12   ;;  %v1268_v21 = vadd.f32 %v2432_v19, %v1199_v13  ;;  %v1300_v22 = vadd.f32 %v2432_v19, %v1231_v14  ;;  %v1200_v23 = vmul.f32 %v2427_v17, %v813_v18  ;;  %v815_v25 = vpop.f32.mrb[47].mxu0  ;;  %v943_v26 = vpop.f32.mrb[47].mxu1 }
 0x197   :  { %v1232_v24 = vmul.f32 %v2427_v17, %v941_v20 }
 0x198   :  { %v1269_v27 = vadd.f32 %v2432_v19, %v1200_v23  ;;  %v1332_v29 = vmax.f32 %v1268_v21, 0.0  ;;  %v1364_v30 = vmax.f32 %v1300_v22, 0.0 }
 0x199   :  { %v1301_v28 = vadd.f32 %v2432_v19, %v1232_v24 }
 0x19a   :  { %v1333_v31 = vmax.f32 %v1269_v27, 0.0 }
 0x19b   :  { %v1365_v32 = vmax.f32 %v1301_v28, 0.0  ;;  %v818_v33 = vpop.f32.mrb[48].mxu0  ;;  %v946_v34 = vpop.f32.mrb[48].mxu1 }
 0x19c   :  { %v1980_v35 = vpack.c.bf16 %v1333_v31, %v1332_v29  ;;  %v1201_v37 = vmul.f32 %v2427_v17, %v818_v33  ;;  %v1233_v38 = vmul.f32 %v2427_v17, %v946_v34  ;;  %v820_v39 = vpop.f32.mrb[49].mxu0  ;;  %v948_v40 = vpop.f32.mrb[49].mxu1 }
 0x19d   :  { %v2060_v36 = vpack.c.bf16 %v1365_v32, %v1364_v30  ;;  %v821_v41 = vpop.f32.mrb[50].mxu0  ;;  %v949_v42 = vpop.f32.mrb[50].mxu1 }
 0x19e   :  { %2092 = vst [vmem:[#allocation8 + $0x58] sm:$0xff] %v1980_v35   ;;  %v1270_v43 = vadd.f32 %v2432_v19, %v1201_v37  ;;  %v1302_v44 = vadd.f32 %v2432_v19, %v1233_v38  ;;  %v1202_v45 = vmul.f32 %v2427_v17, %v821_v41  ;;  %v1234_v46 = vmul.f32 %v2427_v17, %v949_v42  ;;  %v823_v47 = vpop.f32.mrb[51].mxu0  ;;  %v951_v48 = vpop.f32.mrb[51].mxu1 }
 0x19f   :  { %2108 = vst [vmem:[#allocation8 + $0xd8] sm:$0xff] %v2060_v36  }
 0x1a0   :  { %v1271_v49 = vadd.f32 %v2432_v19, %v1202_v45  ;;  %v1303_v50 = vadd.f32 %v2432_v19, %v1234_v46  ;;  %v1334_v51 = vmax.f32 %v1270_v43, 0.0  ;;  %v1366_v52 = vmax.f32 %v1302_v44, 0.0 }
 0x1a2   :  { %v1335_v53 = vmax.f32 %v1271_v49, 0.0  ;;  %v1367_v54 = vmax.f32 %v1303_v50, 0.0 }
 0x1a3   :  { %v826_v55 = vpop.f32.mrb[52].mxu0  ;;  %v954_v56 = vpop.f32.mrb[52].mxu1 }
 0x1a4   :  { %v1985_v57 = vpack.c.bf16 %v1335_v53, %v1334_v51  ;;  %v2065_v58 = vpack.c.bf16 %v1367_v54, %v1366_v52  ;;  %v1203_v59 = vmul.f32 %v2427_v17, %v826_v55  ;;  %v1235_v60 = vmul.f32 %v2427_v17, %v954_v56  ;;  %v828_v61 = vpop.f32.mrb[53].mxu0  ;;  %v956_v62 = vpop.f32.mrb[53].mxu1 }
 0x1a5   :  { %v829_v63 = vpop.f32.mrb[54].mxu0  ;;  %v957_v0 = vpop.f32.mrb[54].mxu1 }
 0x1a6   :  { %2093 = vst [vmem:[#allocation8 + $0x60] sm:$0xff] %v1985_v57   ;;  %2109 = vst [vmem:[#allocation8 + $0xe0] sm:$0xff] %v2065_v58   ;;  %v1272_v1 = vadd.f32 %v2432_v19, %v1203_v59  ;;  %v1304_v2 = vadd.f32 %v2432_v19, %v1235_v60  ;;  %v1204_v3 = vmul.f32 %v2427_v17, %v829_v63  ;;  %v831_v5 = vpop.f32.mrb[55].mxu0  ;;  %v959_v6 = vpop.f32.mrb[55].mxu1 }
 0x1a7   :  { %v1236_v4 = vmul.f32 %v2427_v17, %v957_v0 }
 0x1a8   :  { %v1273_v7 = vadd.f32 %v2432_v19, %v1204_v3  ;;  %v1336_v9 = vmax.f32 %v1272_v1, 0.0  ;;  %v1368_v10 = vmax.f32 %v1304_v2, 0.0 }
 0x1a9   :  { %v1305_v8 = vadd.f32 %v2432_v19, %v1236_v4 }
 0x1aa   :  { %v1337_v11 = vmax.f32 %v1273_v7, 0.0 }
 0x1ab   :  { %v1369_v12 = vmax.f32 %v1305_v8, 0.0  ;;  %v834_v13 = vpop.f32.mrb[56].mxu0  ;;  %v962_v14 = vpop.f32.mrb[56].mxu1 }
 0x1ac   :  { %v1990_v15 = vpack.c.bf16 %v1337_v11, %v1336_v9  ;;  %v1205_v18 = vmul.f32 %v2427_v17, %v834_v13  ;;  %v1237_v20 = vmul.f32 %v2427_v17, %v962_v14  ;;  %v836_v21 = vpop.f32.mrb[57].mxu0  ;;  %v964_v22 = vpop.f32.mrb[57].mxu1 }
 0x1ad   :  { %v2070_v16 = vpack.c.bf16 %v1369_v12, %v1368_v10  ;;  %v837_v23 = vpop.f32.mrb[58].mxu0  ;;  %v965_v24 = vpop.f32.mrb[58].mxu1 }
 0x1ae   :  { %2094 = vst [vmem:[#allocation8 + $0x68] sm:$0xff] %v1990_v15   ;;  %v1274_v25 = vadd.f32 %v2432_v19, %v1205_v18  ;;  %v1306_v26 = vadd.f32 %v2432_v19, %v1237_v20  ;;  %v1206_v27 = vmul.f32 %v2427_v17, %v837_v23  ;;  %v1238_v28 = vmul.f32 %v2427_v17, %v965_v24  ;;  %v839_v29 = vpop.f32.mrb[59].mxu0  ;;  %v967_v30 = vpop.f32.mrb[59].mxu1 }
 0x1af   :  { %2110 = vst [vmem:[#allocation8 + $0xe8] sm:$0xff] %v2070_v16  }
 0x1b0   :  { %v1275_v31 = vadd.f32 %v2432_v19, %v1206_v27  ;;  %v1307_v32 = vadd.f32 %v2432_v19, %v1238_v28  ;;  %v1338_v33 = vmax.f32 %v1274_v25, 0.0  ;;  %v1370_v34 = vmax.f32 %v1306_v26, 0.0 }
 0x1b2   :  { %v1339_v35 = vmax.f32 %v1275_v31, 0.0  ;;  %v1371_v36 = vmax.f32 %v1307_v32, 0.0 }
 0x1b3   :  { %v842_v37 = vpop.f32.mrb[60].mxu0  ;;  %v970_v38 = vpop.f32.mrb[60].mxu1 }
 0x1b4   :  { %v1995_v39 = vpack.c.bf16 %v1339_v35, %v1338_v33  ;;  %v2075_v40 = vpack.c.bf16 %v1371_v36, %v1370_v34  ;;  %v1207_v41 = vmul.f32 %v2427_v17, %v842_v37  ;;  %v1239_v42 = vmul.f32 %v2427_v17, %v970_v38  ;;  %v844_v43 = vpop.f32.mrb[61].mxu0  ;;  %v972_v44 = vpop.f32.mrb[61].mxu1 }
 0x1b5   :  { %v845_v45 = vpop.f32.mrb[62].mxu0  ;;  %v973_v46 = vpop.f32.mrb[62].mxu1 }
 0x1b6   :  { %2095 = vst [vmem:[#allocation8 + $0x70] sm:$0xff] %v1995_v39   ;;  %2111 = vst [vmem:[#allocation8 + $0xf0] sm:$0xff] %v2075_v40   ;;  %v1276_v47 = vadd.f32 %v2432_v19, %v1207_v41  ;;  %v1308_v48 = vadd.f32 %v2432_v19, %v1239_v42  ;;  %v1208_v49 = vmul.f32 %v2427_v17, %v845_v45  ;;  %v847_v51 = vpop.f32.mrb[63].mxu0  ;;  %v975_v52 = vpop.f32.mrb[63].mxu1 }
 0x1b7   :  { %v1240_v50 = vmul.f32 %v2427_v17, %v973_v46 }
 0x1b8   :  { %v1277_v53 = vadd.f32 %v2432_v19, %v1208_v49  ;;  %v1340_v55 = vmax.f32 %v1276_v47, 0.0  ;;  %v1372_v56 = vmax.f32 %v1308_v48, 0.0 }
 0x1b9   :  { %v1309_v54 = vadd.f32 %v2432_v19, %v1240_v50 }
 0x1ba   :  { %v1341_v57 = vmax.f32 %v1277_v53, 0.0 }
 0x1bb   :  { %v1373_v58 = vmax.f32 %v1309_v54, 0.0 }
 0x1bc   :  { %v2000_v59 = vpack.c.bf16 %v1341_v57, %v1340_v55 }
 0x1bd   :  { %v2080_v60 = vpack.c.bf16 %v1373_v58, %v1372_v56 }
 0x1be   :  { %2096 = vst [vmem:[#allocation8 + $0x78] sm:$0xff] %v2000_v59  }
 0x1bf   :  { %2112 = vst [vmem:[#allocation8 + $0xf8] sm:$0xff] %v2080_v60  }
 0x1c0   :  { %2320 = shalt.err (!%p2317_p6)
}
 0x1c1   :  { %s2321_s19 = scalar_lea.hbm %s2580_s3, 4096 }
 0x1c2   :  { %p2322_p7 = scmp.ne.s32.totalorder %s2580_s3, %s2321_s19  ;;  %p2325_p8 = scmp.lt.u32.totalorder %s2321_s19, %s2580_s3 }
 0x1c4   :  { %p2327_p9 = pnand %p2325_p8, %p2322_p7 }
 0x1c6   :  { %2330 = shalt.err (!%p2327_p9)
}
 0x1c7   :  { %1705 = dma.vmem_to_hbm [thread:$0]  %s1700_s15, 4096, %s2580_s3, [#allocation5], %s2341_s0, %s2341_s0, %s2342_s9  }
 0x1c8   :  { %2335 = dma.done.wait [#allocation5], 4096  }
 0x1c9   :  { %2336 = vsyncadd [#allocation5], 4294963200 }
 0x1ca   :  { %1709 = vsyncpa [#allocation4], 1 }
 0x1cb   :  { %1710 = vsyncpa [#allocation7], 1 }
 0x1cc   :  { %1711 = vsyncpa [#allocation5], 1 }

</bundles_post_ra>
